<compile_context>
chip_gen: v6e
topology: v6e:2x2x1
jax: 0.10.0
libtpu: 0.0.40
codegen_flags: <defaults>
</compile_context>

<pallas_src>
import functools

import jax
import jax.numpy as jnp
from jax import lax
from jax.experimental import pallas as pl
from jax.experimental.pallas import tpu as pltpu

EPS = 1e-5


def _round_up(a, b):
    return (a + b - 1) // b * b


def _upconv_stats_kernel(x_ref, w_ref, m_ref, o_ref, stat_ref,
                         p_ref, sum_ref, ssq_ref, *, tap_offsets, cinp):
    """One (batch, spatial-tile) grid step.

    x_ref   : (cinp, T)         bf16 halo'd flat-spatial window of the padded input
    w_ref   : (C4p, 9*cinp)     bf16 parity-expanded weight (constant across the grid)
    m_ref   : (1, s_tile)       f32 validity mask (1 = real output column)
    o_ref   : (C4p, s_tile)     bf16 raw (pre-norm) output tile, streamed every step
    stat_ref: (C4p, 2)          f32 [sum, sum_sq] per parity-channel, written at last tile
    p_ref   : (9*cinp, s_tile)  bf16 VMEM scratch (in-VMEM im2col patch)
    sum_ref : (C4p, 1) f32 / ssq_ref : (C4p, 1) f32 running statistics
    """
    si = pl.program_id(1)
    n_si = pl.num_programs(1)
    s_tile = o_ref.shape[-1]

    @pl.when(si == 0)
    def _init():
        sum_ref[...] = jnp.zeros_like(sum_ref)
        ssq_ref[...] = jnp.zeros_like(ssq_ref)

    # In-VMEM im2col: the nine 3x3 taps are lane-shifted slices of the same flat window.
    for g, off in enumerate(tap_offsets):
        p_ref[g * cinp:(g + 1) * cinp, :] = x_ref[:, off:off + s_tile]

    # MXU: (C4p, 9*cinp) @ (9*cinp, s_tile) -> (C4p, s_tile), f32 accumulate.
    y = jnp.dot(w_ref[...], p_ref[...], preferred_element_type=jnp.float32)

    # Fused single-pass statistics over the valid output columns only.
    m = m_ref[...]
    ym = y * m
    sum_ref[...] += jnp.sum(ym, axis=1, keepdims=True)
    ssq_ref[...] += jnp.sum(ym * ym, axis=1, keepdims=True)

    # Lane-dense streamed store of the raw tile (bf16).
    o_ref[...] = y.astype(o_ref.dtype)

    @pl.when(si == n_si - 1)
    def _fin():
        stat_ref[:, 0:1] = sum_ref[...]
        stat_ref[:, 1:2] = ssq_ref[...]


def _vmem_bytes(s_tile, halo, cinp, c4p, k9p):
    bf16 = 2
    t = _round_up(s_tile + halo, 128)
    need = 0
    need += 2 * cinp * t * bf16          # halo'd input window, double buffered
    need += 2 * c4p * k9p * bf16         # weight (conservatively counted double buffered)
    need += 2 * c4p * s_tile * bf16      # raw output tile, double buffered
    need += 2 * 1 * s_tile * 4           # mask tile, double buffered
    need += k9p * s_tile * bf16          # patch scratch
    need += 2 * c4p * s_tile * 4         # f32 matmul result + masked temporary
    need += 4 * c4p * 4                  # stats scratch / stats output
    return need


def _choose_s_tile(s_valid, halo, cinp, c4p, k9p, vmem_budget, max_s_tile):
    cap = max(128, min(_round_up(s_valid, 128), _round_up(max_s_tile, 128)))
    t = cap
    while t > 128 and _vmem_bytes(t, halo, cinp, c4p, k9p) > vmem_budget:
        t -= 128
    return t


def upconv_bn_relu(x, w_t, bias=None, kernel_size=4, stride=2, padding=1,
                   compute_dtype=jnp.bfloat16, max_s_tile=2048):
    """ConvTranspose2d(k=4, s=2, p=1) + InstanceNorm2d(affine=False) + ReLU.

    x    : (N, C_in, H, W)       NCHW float32
    w_t  : (C_in, C_out, 4, 4)   PyTorch ConvTranspose2d weight layout
    bias : (C_out,) or None — mathematically cancelled by the affine-free InstanceNorm
           mean subtraction, so it is ignored (kept for API parity).
    """
    assert kernel_size == 4 and stride == 2 and padding == 1, "kernel specialized to (4,2,1)"
    del bias

    N, C_in, H, W = x.shape
    C_out = w_t.shape[1]
    Wp, Hp = W + 2, H + 2
    S_valid = H * Wp                      # flat length of the row-pitch-Wp output grid

    cinp = _round_up(C_in, 16)            # bf16 sublane-aligned tap blocks
    c_outp = _round_up(C_out, 8)          # 4*c_outp is a multiple of 32
    c4p = 4 * c_outp
    k9p = 9 * cinp

    # ---- generation-aware VMEM budget / tile selection ----
    try:
        vmem_cap = int(pltpu.get_tpu_info().vmem_capacity_bytes)
    except Exception:                      # conservative fallback if the query is unavailable
        vmem_cap = 128 << 20
    halo = 2 * Wp + 2
    s_tile = _choose_s_tile(S_valid, halo, cinp, c4p, k9p, vmem_cap // 2, max_s_tile)
    n_s = int(pl.cdiv(S_valid, s_tile))
    s_total = n_s * s_tile
    T = _round_up(s_tile + halo, 128)

    need = _vmem_bytes(s_tile, halo, cinp, c4p, k9p)
    vmem_limit = min(max(need + (8 << 20), 32 << 20), int(0.62 * vmem_cap))
    vmem_limit = int(max(vmem_limit, need + (2 << 20)))

    # ---- overlapping halo windows of the zero-padded, channel-padded, bf16 input ----
    xq = jnp.pad(x.astype(compute_dtype),
                 ((0, 0), (0, cinp - C_in), (1, 1), (1, 1)))           # (N, cinp, Hp, Wp)
    xf = xq.reshape(N, cinp, Hp * Wp)
    L = (n_s - 1) * s_tile + T
    xf = jnp.pad(xf, ((0, 0), (0, 0), (0, L - Hp * Wp)))
    idx = (jnp.arange(n_s) * s_tile)[:, None] + jnp.arange(T)[None, :]
    x_tiles = jnp.take(xf, idx, axis=2)                                # (N, cinp, n_s, T)
    x_tiles = jnp.transpose(x_tiles, (0, 2, 1, 3))                     # (N, n_s, cinp, T)

    # ---- validity mask over the flat output grid (excludes pad columns / tile overflow) ----
    q = jnp.arange(s_total, dtype=jnp.int32)
    colmask = ((q < S_valid) & ((q % Wp) < W)).astype(jnp.float32)[None, :]   # (1, s_total)

    # ---- parity-expanded weight (4*c_outp, 9*cinp) ----
    # Output parity (py,px), kernel tap (r,s) = (2a+py, 2b+px) reads padded-input shift
    # (dy,dx) = (py+a, px+b) with weight w_t[ci, co, 3-r, 3-s].
    w_f32 = w_t.astype(jnp.float32)
    wmat = jnp.zeros((c4p, k9p), jnp.float32)
    for py in range(2):
        for px in range(2):
            par = py * 2 + px
            for a in range(2):
                for b in range(2):
                    g = (py + a) * 3 + (px + b)
                    r, s_ = 2 * a + py, 2 * b + px
                    blk = jnp.transpose(w_f32[:, :, 3 - r, 3 - s_], (1, 0))   # (C_out, C_in)
                    wmat = wmat.at[par * c_outp:par * c_outp + C_out,
                                   g * cinp:g * cinp + C_in].set(blk)
    wmat = wmat.astype(compute_dtype)

    tap_offsets = tuple(dy * Wp + dx for dy in range(3) for dx in range(3))
    kernel = functools.partial(_upconv_stats_kernel, tap_offsets=tap_offsets, cinp=cinp)

    y_raw, stats = pl.pallas_call(
        kernel,
        out_shape=(jax.ShapeDtypeStruct((N, c4p, s_total), compute_dtype),
                   jax.ShapeDtypeStruct((N, c4p, 2), jnp.float32)),
        grid_spec=pltpu.PrefetchScalarGridSpec(
            num_scalar_prefetch=0,
            grid=(N, n_s),
            in_specs=[
                pl.BlockSpec((None, None, cinp, T), lambda n, si: (n, si, 0, 0)),
                # TODO(synk): single-buffer this constant-index block to save one weight
                # copy of VMEM at large channel counts.
                pl.BlockSpec((c4p, k9p), lambda n, si: (0, 0)),
                pl.BlockSpec((1, s_tile), lambda n, si: (0, si)),
            ],
            out_specs=[
                pl.BlockSpec((None, c4p, s_tile), lambda n, si: (n, 0, si)),
                pl.BlockSpec((None, c4p, 2), lambda n, si: (n, 0, 0)),
            ],
            scratch_shapes=[
                pltpu.VMEM((k9p, s_tile), compute_dtype),   # in-VMEM im2col patch
                pltpu.VMEM((c4p, 1), jnp.float32),          # running sum
                pltpu.VMEM((c4p, 1), jnp.float32),          # running sum of squares
            ],
        ),
        compiler_params=pltpu.CompilerParams(
            dimension_semantics=("parallel", "arbitrary"),
            vmem_limit_bytes=vmem_limit,
        ),
    )(x_tiles, wmat, colmask)

    # ---- InstanceNorm (affine=False, biased var) + ReLU + depth-to-space (fused by XLA) ----
    cnt = 4.0 * H * W
    sums = stats[:, :, 0].reshape(N, 4, c_outp).sum(axis=1)
    ssqs = stats[:, :, 1].reshape(N, 4, c_outp).sum(axis=1)
    mean = sums / cnt
    # TODO(synk): E[y^2]-E[y]^2 in f32 can lose precision at very large spatial sizes;
    # switch to per-tile centered partials if that regime matters.
    var = jnp.maximum(ssqs / cnt - mean * mean, 0.0)
    inv = lax.rsqrt(var + EPS)

    yv = y_raw[:, :, :S_valid].reshape(N, 2, 2, c_outp, H, Wp)
    yv = yv[:, :, :, :C_out, :, :W].astype(jnp.float32)
    out = jnp.maximum((yv - mean[:, None, None, :C_out, None, None])
                      * inv[:, None, None, :C_out, None, None], 0.0)
    # TODO(synk): fuse depth-to-space into an in-kernel normalize pass to save this XLA
    # transpose, and split the S axis across the two v7x TensorCores when N == 1.
    out = jnp.transpose(out, (0, 3, 4, 1, 5, 2))
    return out.reshape(N, C_out, 2 * H, 2 * W)


def _reference(x, w_t, bias, kernel_size=4, stride=2, padding=1):
    """Pure-JAX f32 reference (ConvTranspose2d + InstanceNorm2d + ReLU)."""
    pad = kernel_size - 1 - padding
    w_conv = jnp.transpose(w_t[:, :, ::-1, ::-1], (1, 0, 2, 3))   # (C_out, C_in, kH, kW)
    y = lax.conv_general_dilated(
        x, w_conv, window_strides=(1, 1),
        padding=[(pad, pad), (pad, pad)],
        lhs_dilation=(stride, stride),
        dimension_numbers=("NCHW", "OIHW", "NCHW"),
    ) + bias[None, :, None, None]
    mean = jnp.mean(y, axis=(2, 3), keepdims=True)
    var = jnp.mean((y - mean) ** 2, axis=(2, 3), keepdims=True)
    return jnp.maximum((y - mean) * lax.rsqrt(var + EPS), 0.0)


if __name__ == "__main__":
    def _case(key, n, c_in, c_out, h, w, **kwargs):
        k = 4
        kx, kw_, kb = jax.random.split(key, 3)
        x = jax.random.normal(kx, (n, c_in, h, w), jnp.float32)
        fan = c_in * k * k
        bound = 1.0 / (fan ** 0.5)
        w_t = jax.random.uniform(kw_, (c_in, c_out, k, k), jnp.float32, -bound, bound)
        bias = jax.random.uniform(kb, (c_out,), jnp.float32, -bound, bound)
        ref = jax.block_until_ready(_reference(x, w_t, bias))
        out = jax.block_until_ready(
            jax.jit(functools.partial(upconv_bn_relu, **kwargs))(x, w_t, bias))
        assert out.shape == (n, c_out, 2 * h, 2 * w), out.shape
        err = float(jnp.max(jnp.abs(out - ref)))
        # bf16 matmul operands + bf16 raw-tile storage vs the f32 reference.
        assert err < 6e-2, err
        return err

    key = jax.random.PRNGKey(0)
    k1, k2, k3 = jax.random.split(key, 3)
    _case(k1, 2, 4, 8, 16, 16)                       # single spatial tile
    _case(k2, 2, 4, 8, 16, 16, max_s_tile=128)       # multi-tile: stats accumulation + ragged mask
    _case(k3, 1, 3, 6, 8, 8)                         # channel-padding path (C_in->16, C_out->8)
    print("KERNEL_OK")
</pallas_src>

<mosaic_0001>
module attributes {stable_mosaic.version = 11 : i64} {
  func.func @_upconv_stats_kernel(%arg0: i32, %arg1: i32, %arg2: memref<1x1x16x512xbf16, #tpu.memory_space<vmem>>, %arg3: memref<32x144xbf16, #tpu.memory_space<vmem>>, %arg4: memref<1x384xf32, #tpu.memory_space<vmem>>, %arg5: memref<1x32x384xbf16, #tpu.memory_space<vmem>>, %arg6: memref<1x32x2xf32, #tpu.memory_space<vmem>>, %arg7: memref<144x384xbf16, #tpu.memory_space<vmem>>, %arg8: memref<32x1xf32, #tpu.memory_space<vmem>>, %arg9: memref<32x1xf32, #tpu.memory_space<vmem>>) attributes {dimension_semantics = [#tpu.dimension_semantics<parallel>, #tpu.dimension_semantics<arbitrary>], iteration_bounds = array<i64: 2, 1>, scalar_prefetch = 0 : i64, scratch_operands = 3 : i64, tpu.core_type = #tpu.core_type<tc>, window_params = [{transform_indices = @transform_0, window_bounds = array<i64: 1, 1, 16, 512>}, {pipeline_mode = #tpu.pipeline_mode<synchronous>, transform_indices = @transform_1, window_bounds = array<i64: 32, 144>}, {transform_indices = @transform_2, window_bounds = array<i64: 1, 384>}, {transform_indices = @transform_3, window_bounds = array<i64: 1, 32, 384>}, {transform_indices = @transform_4, window_bounds = array<i64: 1, 32, 2>}]} {
    %c0_i32 = arith.constant 0 : i32
    %0 = arith.cmpi eq, %arg1, %c0_i32 : i32
    %1 = arith.extui %0 : i1 to i32
    %c0_i32_0 = arith.constant 0 : i32
    %2 = arith.cmpi ne, %1, %c0_i32_0 : i32
    scf.if %2 {
      %cst_59 = arith.constant 0.000000e+00 : f32
      %54 = vector.broadcast %cst_59 : f32 to vector<32x1xf32>
      %c0_60 = arith.constant 0 : index
      %c0_61 = arith.constant 0 : index
      %55 = vector.load %arg8[%c0_60, %c0_61] : memref<32x1xf32, #tpu.memory_space<vmem>>, vector<32x1xf32>
      tpu.vector_store %arg8[%c0_60, %c0_61], %54 {strides = array<i32>} : memref<32x1xf32, #tpu.memory_space<vmem>>, vector<32x1xf32>,
      %cst_62 = arith.constant 0.000000e+00 : f32
      %56 = vector.broadcast %cst_62 : f32 to vector<32x1xf32>
      %c0_63 = arith.constant 0 : index
      %c0_64 = arith.constant 0 : index
      %57 = vector.load %arg9[%c0_63, %c0_64] : memref<32x1xf32, #tpu.memory_space<vmem>>, vector<32x1xf32>
      tpu.vector_store %arg9[%c0_63, %c0_64], %56 {strides = array<i32>} : memref<32x1xf32, #tpu.memory_space<vmem>>, vector<32x1xf32>,
    } else {
    }
    %c0 = arith.constant 0 : index
    %c0_1 = arith.constant 0 : index
    %c0_2 = arith.constant 0 : index
    %c0_3 = arith.constant 0 : index
    %3 = vector.load %arg2[%c0, %c0_1, %c0_2, %c0_3] : memref<1x1x16x512xbf16, #tpu.memory_space<vmem>>, vector<1x1x16x384xbf16>
    %4 = vector.shape_cast %3 : vector<1x1x16x384xbf16> to vector<16x384xbf16>
    %c0_4 = arith.constant 0 : index
    %c0_5 = arith.constant 0 : index
    %5 = vector.load %arg7[%c0_4, %c0_5] : memref<144x384xbf16, #tpu.memory_space<vmem>>, vector<16x384xbf16>
    tpu.vector_store %arg7[%c0_4, %c0_5], %4 {strides = array<i32>} : memref<144x384xbf16, #tpu.memory_space<vmem>>, vector<16x384xbf16>,
    %c0_6 = arith.constant 0 : index
    %c0_7 = arith.constant 0 : index
    %c0_8 = arith.constant 0 : index
    %c1 = arith.constant 1 : index
    %6 = vector.load %arg2[%c0_6, %c0_7, %c0_8, %c1] : memref<1x1x16x512xbf16, #tpu.memory_space<vmem>>, vector<1x1x16x384xbf16>
    %7 = vector.shape_cast %6 : vector<1x1x16x384xbf16> to vector<16x384xbf16>
    %c16 = arith.constant 16 : index
    %c0_9 = arith.constant 0 : index
    %8 = vector.load %arg7[%c16, %c0_9] : memref<144x384xbf16, #tpu.memory_space<vmem>>, vector<16x384xbf16>
    tpu.vector_store %arg7[%c16, %c0_9], %7 {strides = array<i32>} : memref<144x384xbf16, #tpu.memory_space<vmem>>, vector<16x384xbf16>,
    %c0_10 = arith.constant 0 : index
    %c0_11 = arith.constant 0 : index
    %c0_12 = arith.constant 0 : index
    %c2 = arith.constant 2 : index
    %9 = vector.load %arg2[%c0_10, %c0_11, %c0_12, %c2] : memref<1x1x16x512xbf16, #tpu.memory_space<vmem>>, vector<1x1x16x384xbf16>
    %10 = vector.shape_cast %9 : vector<1x1x16x384xbf16> to vector<16x384xbf16>
    %c32 = arith.constant 32 : index
    %c0_13 = arith.constant 0 : index
    %11 = vector.load %arg7[%c32, %c0_13] : memref<144x384xbf16, #tpu.memory_space<vmem>>, vector<16x384xbf16>
    tpu.vector_store %arg7[%c32, %c0_13], %10 {strides = array<i32>} : memref<144x384xbf16, #tpu.memory_space<vmem>>, vector<16x384xbf16>,
    %c0_14 = arith.constant 0 : index
    %c0_15 = arith.constant 0 : index
    %c0_16 = arith.constant 0 : index
    %c18 = arith.constant 18 : index
    %12 = vector.load %arg2[%c0_14, %c0_15, %c0_16, %c18] : memref<1x1x16x512xbf16, #tpu.memory_space<vmem>>, vector<1x1x16x384xbf16>
    %13 = vector.shape_cast %12 : vector<1x1x16x384xbf16> to vector<16x384xbf16>
    %c48 = arith.constant 48 : index
    %c0_17 = arith.constant 0 : index
    %14 = vector.load %arg7[%c48, %c0_17] : memref<144x384xbf16, #tpu.memory_space<vmem>>, vector<16x384xbf16>
    tpu.vector_store %arg7[%c48, %c0_17], %13 {strides = array<i32>} : memref<144x384xbf16, #tpu.memory_space<vmem>>, vector<16x384xbf16>,
    %c0_18 = arith.constant 0 : index
    %c0_19 = arith.constant 0 : index
    %c0_20 = arith.constant 0 : index
    %c19 = arith.constant 19 : index
    %15 = vector.load %arg2[%c0_18, %c0_19, %c0_20, %c19] : memref<1x1x16x512xbf16, #tpu.memory_space<vmem>>, vector<1x1x16x384xbf16>
    %16 = vector.shape_cast %15 : vector<1x1x16x384xbf16> to vector<16x384xbf16>
    %c64 = arith.constant 64 : index
    %c0_21 = arith.constant 0 : index
    %17 = vector.load %arg7[%c64, %c0_21] : memref<144x384xbf16, #tpu.memory_space<vmem>>, vector<16x384xbf16>
    tpu.vector_store %arg7[%c64, %c0_21], %16 {strides = array<i32>} : memref<144x384xbf16, #tpu.memory_space<vmem>>, vector<16x384xbf16>,
    %c0_22 = arith.constant 0 : index
    %c0_23 = arith.constant 0 : index
    %c0_24 = arith.constant 0 : index
    %c20 = arith.constant 20 : index
    %18 = vector.load %arg2[%c0_22, %c0_23, %c0_24, %c20] : memref<1x1x16x512xbf16, #tpu.memory_space<vmem>>, vector<1x1x16x384xbf16>
    %19 = vector.shape_cast %18 : vector<1x1x16x384xbf16> to vector<16x384xbf16>
    %c80 = arith.constant 80 : index
    %c0_25 = arith.constant 0 : index
    %20 = vector.load %arg7[%c80, %c0_25] : memref<144x384xbf16, #tpu.memory_space<vmem>>, vector<16x384xbf16>
    tpu.vector_store %arg7[%c80, %c0_25], %19 {strides = array<i32>} : memref<144x384xbf16, #tpu.memory_space<vmem>>, vector<16x384xbf16>,
    %c0_26 = arith.constant 0 : index
    %c0_27 = arith.constant 0 : index
    %c0_28 = arith.constant 0 : index
    %c36 = arith.constant 36 : index
    %21 = vector.load %arg2[%c0_26, %c0_27, %c0_28, %c36] : memref<1x1x16x512xbf16, #tpu.memory_space<vmem>>, vector<1x1x16x384xbf16>
    %22 = vector.shape_cast %21 : vector<1x1x16x384xbf16> to vector<16x384xbf16>
    %c96 = arith.constant 96 : index
    %c0_29 = arith.constant 0 : index
    %23 = vector.load %arg7[%c96, %c0_29] : memref<144x384xbf16, #tpu.memory_space<vmem>>, vector<16x384xbf16>
    tpu.vector_store %arg7[%c96, %c0_29], %22 {strides = array<i32>} : memref<144x384xbf16, #tpu.memory_space<vmem>>, vector<16x384xbf16>,
    %c0_30 = arith.constant 0 : index
    %c0_31 = arith.constant 0 : index
    %c0_32 = arith.constant 0 : index
    %c37 = arith.constant 37 : index
    %24 = vector.load %arg2[%c0_30, %c0_31, %c0_32, %c37] : memref<1x1x16x512xbf16, #tpu.memory_space<vmem>>, vector<1x1x16x384xbf16>
    %25 = vector.shape_cast %24 : vector<1x1x16x384xbf16> to vector<16x384xbf16>
    %c112 = arith.constant 112 : index
    %c0_33 = arith.constant 0 : index
    %26 = vector.load %arg7[%c112, %c0_33] : memref<144x384xbf16, #tpu.memory_space<vmem>>, vector<16x384xbf16>
    tpu.vector_store %arg7[%c112, %c0_33], %25 {strides = array<i32>} : memref<144x384xbf16, #tpu.memory_space<vmem>>, vector<16x384xbf16>,
    %c0_34 = arith.constant 0 : index
    %c0_35 = arith.constant 0 : index
    %c0_36 = arith.constant 0 : index
    %c38 = arith.constant 38 : index
    %27 = vector.load %arg2[%c0_34, %c0_35, %c0_36, %c38] : memref<1x1x16x512xbf16, #tpu.memory_space<vmem>>, vector<1x1x16x384xbf16>
    %28 = vector.shape_cast %27 : vector<1x1x16x384xbf16> to vector<16x384xbf16>
    %c128 = arith.constant 128 : index
    %c0_37 = arith.constant 0 : index
    %29 = vector.load %arg7[%c128, %c0_37] : memref<144x384xbf16, #tpu.memory_space<vmem>>, vector<16x384xbf16>
    tpu.vector_store %arg7[%c128, %c0_37], %28 {strides = array<i32>} : memref<144x384xbf16, #tpu.memory_space<vmem>>, vector<16x384xbf16>,
    %c0_38 = arith.constant 0 : index
    %c0_39 = arith.constant 0 : index
    %30 = vector.load %arg3[%c0_38, %c0_39] : memref<32x144xbf16, #tpu.memory_space<vmem>>, vector<32x144xbf16>
    %c0_40 = arith.constant 0 : index
    %c0_41 = arith.constant 0 : index
    %31 = vector.load %arg7[%c0_40, %c0_41] : memref<144x384xbf16, #tpu.memory_space<vmem>>, vector<144x384xbf16>
    %cst = arith.constant dense<0.000000e+00> : vector<32x384xf32>
    %32 = tpu.matmul %30, %31, %cst {dimension_numbers = #tpu.dot_dimension_numbers<[1], [0], [0], [1], [0, 0, 1, 1], [], []>} : vector<32x144xbf16>, vector<144x384xbf16>, vector<32x384xf32> -> vector<32x384xf32>
    %c0_42 = arith.constant 0 : index
    %c0_43 = arith.constant 0 : index
    %33 = vector.load %arg4[%c0_42, %c0_43] : memref<1x384xf32, #tpu.memory_space<vmem>>, vector<1x384xf32>
    %34 = vector.broadcast %33 : vector<1x384xf32> to vector<32x384xf32>
    %35 = arith.mulf %32, %34 : vector<32x384xf32>
    %c0_44 = arith.constant 0 : index
    %c0_45 = arith.constant 0 : index
    %36 = vector.load %arg8[%c0_44, %c0_45] : memref<32x1xf32, #tpu.memory_space<vmem>>, vector<32x1xf32>
    %cst_46 = arith.constant dense<0.000000e+00> : vector<32xf32>
    %37 = vector.multi_reduction <add>, %35, %cst_46 [1] : vector<32x384xf32> to vector<32xf32>
    %38 = vector.shape_cast %37 : vector<32xf32> to vector<32x1xf32>
    %39 = arith.addf %36, %38 : vector<32x1xf32>
    %c0_47 = arith.constant 0 : index
    %c0_48 = arith.constant 0 : index
    %40 = vector.load %arg8[%c0_47, %c0_48] : memref<32x1xf32, #tpu.memory_space<vmem>>, vector<32x1xf32>
    tpu.vector_store %arg8[%c0_47, %c0_48], %39 {strides = array<i32>} : memref<32x1xf32, #tpu.memory_space<vmem>>, vector<32x1xf32>,
    %c0_49 = arith.constant 0 : index
    %c0_50 = arith.constant 0 : index
    %41 = vector.load %arg9[%c0_49, %c0_50] : memref<32x1xf32, #tpu.memory_space<vmem>>, vector<32x1xf32>
    %42 = arith.mulf %35, %35 : vector<32x384xf32>
    %cst_51 = arith.constant dense<0.000000e+00> : vector<32xf32>
    %43 = vector.multi_reduction <add>, %42, %cst_51 [1] : vector<32x384xf32> to vector<32xf32>
    %44 = vector.shape_cast %43 : vector<32xf32> to vector<32x1xf32>
    %45 = arith.addf %41, %44 : vector<32x1xf32>
    %c0_52 = arith.constant 0 : index
    %c0_53 = arith.constant 0 : index
    %46 = vector.load %arg9[%c0_52, %c0_53] : memref<32x1xf32, #tpu.memory_space<vmem>>, vector<32x1xf32>
    tpu.vector_store %arg9[%c0_52, %c0_53], %45 {strides = array<i32>} : memref<32x1xf32, #tpu.memory_space<vmem>>, vector<32x1xf32>,
    %47 = arith.truncf %32 : vector<32x384xf32> to vector<32x384xbf16>
    %c0_54 = arith.constant 0 : index
    %c0_55 = arith.constant 0 : index
    %c0_56 = arith.constant 0 : index
    %48 = vector.load %arg5[%c0_54, %c0_55, %c0_56] : memref<1x32x384xbf16, #tpu.memory_space<vmem>>, vector<1x32x384xbf16>
    %49 = vector.shape_cast %48 : vector<1x32x384xbf16> to vector<32x384xbf16>
    %50 = vector.shape_cast %47 : vector<32x384xbf16> to vector<1x32x384xbf16>
    tpu.vector_store %arg5[%c0_54, %c0_55, %c0_56], %50 {strides = array<i32>} : memref<1x32x384xbf16, #tpu.memory_space<vmem>>, vector<1x32x384xbf16>,
    %c0_i32_57 = arith.constant 0 : i32
    %51 = arith.cmpi eq, %arg1, %c0_i32_57 : i32
    %52 = arith.extui %51 : i1 to i32
    %c0_i32_58 = arith.constant 0 : i32
    %53 = arith.cmpi ne, %52, %c0_i32_58 : i32
    scf.if %53 {
      %c0_59 = arith.constant 0 : index
      %c0_60 = arith.constant 0 : index
      %54 = vector.load %arg8[%c0_59, %c0_60] : memref<32x1xf32, #tpu.memory_space<vmem>>, vector<32x1xf32>
      %c0_61 = arith.constant 0 : index
      %c0_62 = arith.constant 0 : index
      %c0_63 = arith.constant 0 : index
      %55 = vector.load %arg6[%c0_61, %c0_62, %c0_63] : memref<1x32x2xf32, #tpu.memory_space<vmem>>, vector<1x32x1xf32>
      %56 = vector.shape_cast %55 : vector<1x32x1xf32> to vector<32x1xf32>
      %57 = vector.shape_cast %54 : vector<32x1xf32> to vector<1x32x1xf32>
      tpu.vector_store %arg6[%c0_61, %c0_62, %c0_63], %57 {strides = array<i32>} : memref<1x32x2xf32, #tpu.memory_space<vmem>>, vector<1x32x1xf32>,
      %c0_64 = arith.constant 0 : index
      %c0_65 = arith.constant 0 : index
      %58 = vector.load %arg9[%c0_64, %c0_65] : memref<32x1xf32, #tpu.memory_space<vmem>>, vector<32x1xf32>
      %c0_66 = arith.constant 0 : index
      %c0_67 = arith.constant 0 : index
      %c1_68 = arith.constant 1 : index
      %59 = vector.load %arg6[%c0_66, %c0_67, %c1_68] : memref<1x32x2xf32, #tpu.memory_space<vmem>>, vector<1x32x1xf32>
      %60 = vector.shape_cast %59 : vector<1x32x1xf32> to vector<32x1xf32>
      %61 = vector.shape_cast %58 : vector<32x1xf32> to vector<1x32x1xf32>
      tpu.vector_store %arg6[%c0_66, %c0_67, %c1_68], %61 {strides = array<i32>} : memref<1x32x2xf32, #tpu.memory_space<vmem>>, vector<1x32x1xf32>,
    } else {
    }
    return
  }
  func.func @transform_0(%arg0: i32, %arg1: i32) -> (i32, i32, i32, i32) {
    %c0_i32 = arith.constant 0 : i32
    %c0_i32_0 = arith.constant 0 : i32
    %c0_i32_1 = arith.constant 0 : i32
    return %arg0, %arg1, %c0_i32, %c0_i32_0 : i32, i32, i32, i32
  }
  func.func @transform_1(%arg0: i32, %arg1: i32) -> (i32, i32) {
    %c0_i32 = arith.constant 0 : i32
    %c0_i32_0 = arith.constant 0 : i32
    %c0_i32_1 = arith.constant 0 : i32
    return %c0_i32, %c0_i32_0 : i32, i32
  }
  func.func @transform_2(%arg0: i32, %arg1: i32) -> (i32, i32) {
    %c0_i32 = arith.constant 0 : i32
    %c0_i32_0 = arith.constant 0 : i32
    return %c0_i32, %arg1 : i32, i32
  }
  func.func @transform_3(%arg0: i32, %arg1: i32) -> (i32, i32, i32) {
    %c0_i32 = arith.constant 0 : i32
    %c0_i32_0 = arith.constant 0 : i32
    return %arg0, %c0_i32, %arg1 : i32, i32, i32
  }
  func.func @transform_4(%arg0: i32, %arg1: i32) -> (i32, i32, i32) {
    %c0_i32 = arith.constant 0 : i32
    %c0_i32_0 = arith.constant 0 : i32
    %c0_i32_1 = arith.constant 0 : i32
    return %arg0, %c0_i32, %c0_i32_0 : i32, i32, i32
  }
}

</mosaic_0001>

<bundles_post_ra>
// kernel: squeeze.34
= control target key start
LH: loop header
LB: loop body
LE: loop exit
PB: predicated region body
PF: predicated region fallthrough
CT: control target
= control target key end

     0   :  { %s47_s8 = smov 104   ;;  %vm8_vm0 = vcmask 64512   ;;  %s48_s9 = smov 112   ;;  %s68_s0 = inlined_call_operand.vmem [shape: f32[2,32], index: 0, kind: input, shape index: {}]   ;;  %s69_s1 = inlined_call_operand.vmem [shape: f32[2,4,8], index: 1, kind: output, shape index: {}]  }
   0x1   :  { %v5_v0 = vld [vmem:[%s68_s0] sm:$0x3]  ;;  %s46_s0 = smov 120  }
   0x2   :  { %6 = vst [vmem:[#allocation1] sm:$0x3] %v5_v0 }
   0x9   :  { %v10_v1 = vld [vmem:[#allocation1] sm:$0x3]  }
   0xa   :  { %v22_v2 = vld [vmem:[#allocation1] sm:$0x3]   ;;  %11 = vrot.lane.b32.xlu0 %v10_v1, %s46_s0 }
   0xb   :  { %23 = vrot.lane.b32.xlu1 %v22_v2, %s47_s8  ;;  %v7_v3 = vld [vmem:[#allocation1] sm:$0x3]  }
   0xc   :  { %v16_v4 = vld [vmem:[#allocation1] sm:$0x3]   ;;  %9 = vst.msk [vmem:[#allocation0] ss:$8 sm:$0x3] %vm8_vm0, %v7_v3  }
   0xe   :  { %17 = vrot.lane.b32.xlu0 %v16_v4, %s48_s9 }
  0x7c   :  { %v12_v5 = vpop.permute.xlu0 %11  }
  0x7d   :  { %v24_v6 = vpop.permute.xlu1 %23   ;;  %15 = vst.msk [vmem:[#allocation0 + $0x1] ss:$8 sm:$0x3] %vm8_vm0, %v12_v5  }
  0x7e   :  { %27 = vst.msk [vmem:[#allocation0 + $0x3] ss:$8 sm:$0x3] %vm8_vm0, %v24_v6  }
  0x80   :  { %v18_v7 = vpop.permute.xlu0 %17  }
  0x81   :  { %21 = vst.msk [vmem:[#allocation0 + $0x2] ss:$8 sm:$0x3] %vm8_vm0, %v18_v7  }
  0x88   :  { %v32_v8 = vld [vmem:[#allocation0] sm:$0xf]  ;;  %v37_v9 = vld [vmem:[#allocation0 + $0x8] sm:$0xf] }
  0x89   :  { %35 = vst [vmem:[%s69_s1] sm:$0xf] %v32_v8  ;;  %42 = vst [vmem:[%s69_s1 + $0x4] sm:$0xf] %v37_v9 }

// kernel: upconv_bn_relu.1
= control target key start
LH: loop header
LB: loop body
LE: loop exit
PB: predicated region body
PF: predicated region fallthrough
CT: control target
= control target key end

     0   :  { %s1377_s15 = smov 0   ;;  %s1379_s16 = smov 0   ;;  %s1561_s0 = inlined_call_operand.vmem [shape: bf16[2,1,16,512], index: 0, kind: input, shape index: {}]   ;;  %s1562_s1 = inlined_call_operand.vmem [shape: bf16[32,144], index: 1, kind: input, shape index: {}]   ;;  %s1563_s2 = inlined_call_operand.vmem [shape: f32[1,384], index: 2, kind: input, shape index: {}]   ;;  %s1564_s3 = inlined_call_operand.vmem [shape: bf16[2,32,384], index: 3, kind: output, shape index: {0}]   ;;  %s1565_s4 = inlined_call_operand.vmem [shape: f32[2,32,2], index: 4, kind: output, shape index: {1}]  }
   0x1   :  { %s1381_s17 = smov 0  }
   0x2 LB: > { %s27_s18 = sadd.s32 1, %s1335_s16  ;;  %p1203_p0 = scmp.ge.s32.totalorder %s1339_s17, 1  ;;  %s1339_s17 = sphi %s1381_s17, %s15_s17   ;;  %s1335_s16 = sphi %s1379_s16, %s1567_s16   ;;  %s1331_s15 = sphi %s1377_s15, %s1566_s15  }
   0x3   : > { %p29_p1 = scmp.ge.s32.totalorder %s27_s18, 2  ;;  %p195_p2 = scmp.lt.s32.totalorder %s1339_s17, 3 }
   0x5   : > { %s1569_s18 = smov (%p29_p1, %s27_s18), 0  ;;  %p196_p3 = pnand %p1203_p0, %p195_p2 }
   0x6   : > { %p238_p4 = scmp.lt.s32.totalorder (!%p196_p3), %s1331_s15, 1  ;;  %s1341_s23 = smov (!%p196_p3), 91  }
   0x7   : > { %199 = sbr.rel (%p196_p3) target bundleno = 680 (0x2a8), region = 32  ;;  %s1343_s24 = smov (!%p196_p3), 92  }
   0x8   : > { %s1344_s25 = smov (!%p196_p3), 108   ;;  %s1345_s26 = smov (!%p196_p3), 109  }
   0x9   : > { %s1346_s27 = smov (!%p196_p3), 110   ;;  %s1347_s28 = smov (!%p196_p3), 126  }
   0xa   : > { %s1348_s29 = smov (!%p196_p3), 127   ;;  %s1349_s6 = smov (!%p196_p3), 90  }
   0xc   : > { %s1571_s15 = smov (!%p238_p4, %s1331_s15), 1  ;;  %v1342_v4 = vmov 0   ;;  %v1313_v9 = vld [vmem:[%s1562_s1 + $0x4] ss:$8 sps:$4 sm:$0xff]   ;;  %vm772_vm0 = vcmask 130048   ;;  %vm309_vm1 = vcmask 1043456  }
   0xd   : > { %s1254_s19 = sshll.u32 %s1571_s15, 5  ;;  %832 = vmatprep.subr.bf16.mxu1 %v1342_v4  ;;  %1242 = vmatprep.mubr.msk.bf16.mxu1 %vm772_vm0, %v1313_v9  ;;  %vm521_vm2 = vcmask 744448   ;;  %vm486_vm3 = vcmask 752640   ;;  %vm451_vm4 = vcmask 883712   ;;  %vm416_vm5 = vcmask 891904   ;;  %s1264_s20 = smul.u32 48, %s1571_s15 }
   0xe   : > { %s1403_s22 = scalar_lea.vmem %s1561_s0, %s1254_s19  ;;  %1240 = vmatprep.mubr.msk.bf16.mxu0 %vm772_vm0, %v1313_v9  ;;  %vm381_vm6 = vcmask 900096   ;;  %vm346_vm7 = vcmask 1031168   ;;  %vm311_vm8 = vcmask 1039360   ;;  %vm556_vm9 = vcmask 736256  }
   0xf   : > { %v1406_v0 = vld [vmem:[%s1403_s22 + $0x10] sm:$0xff]  ;;  %v1409_v1 = vld [vmem:[%s1403_s22] sm:$0xff]  ;;  %v503_v2 = vld [vmem:[%s1403_s22 + $0x18] sm:$0xff]  ;;  %vm272_vm10 = vcmask 7168   ;;  %vm1058_vm11 = vcmask 15368  }
  0x10   : > { %512 = vrot.lane.b32.xlu1 %v1406_v0, %s1341_s23  ;;  %508 = vrot.lane.b32.xlu0 %v1409_v1, %s1341_s23  ;;  %v501_v3 = vld [vmem:[%s1403_s22 + $0x8] sm:$0xff]  ;;  %v284_v6 = vld [vmem:[%s1403_s22 + $0x18] sm:$0xf]  ;;  %v1214_v7 = vcombine.high %v1409_v1, %v1406_v0  ;;  %v1213_v8 = vcombine.low %v1409_v1, %v1406_v0 }
  0x11   : > { %v282_v5 = vld [vmem:[%s1403_s22 + $0x8] sm:$0xf]  ;;  %288 = vst [vmem:[#allocation2 + $0x14] sm:$0xf] %v284_v6 }
  0x12   : > { %286 = vst [vmem:[#allocation2 + $0x8] sm:$0xf] %v282_v5 }
  0x14   : > { %514 = vrot.lane.b32.xlu1 %v503_v2, %s1341_s23  ;;  %510 = vrot.lane.b32.xlu0 %v501_v3, %s1341_s23  ;;  %s1525_s23 = scalar_lea.vmem %s1564_s3, %s1264_s20 }
  0x18   : > { %475 = vrot.lane.b32.xlu1 %v501_v3, %s1343_s24  ;;  %473 = vrot.lane.b32.xlu0 %v1409_v1, %s1343_s24 }
  0x1c   : > { %479 = vrot.lane.b32.xlu1 %v503_v2, %s1343_s24  ;;  %477 = vrot.lane.b32.xlu0 %v1406_v0, %s1343_s24  ;;  %s1351_s24 = smov 1  }
  0x20   : > { %440 = vrot.lane.b32.xlu1 %v501_v3, %s1344_s25  ;;  %438 = vrot.lane.b32.xlu0 %v1409_v1, %s1344_s25 }
  0x24   : > { %444 = vrot.lane.b32.xlu1 %v503_v2, %s1344_s25  ;;  %442 = vrot.lane.b32.xlu0 %v1406_v0, %s1344_s25 }
  0x28   : > { %405 = vrot.lane.b32.xlu1 %v501_v3, %s1345_s26  ;;  %403 = vrot.lane.b32.xlu0 %v1409_v1, %s1345_s26 }
  0x2c   : > { %409 = vrot.lane.b32.xlu1 %v503_v2, %s1345_s26  ;;  %407 = vrot.lane.b32.xlu0 %v1406_v0, %s1345_s26 }
  0x30   : > { %370 = vrot.lane.b32.xlu1 %v501_v3, %s1346_s27  ;;  %368 = vrot.lane.b32.xlu0 %v1409_v1, %s1346_s27 }
  0x34   : > { %374 = vrot.lane.b32.xlu1 %v503_v2, %s1346_s27  ;;  %372 = vrot.lane.b32.xlu0 %v1406_v0, %s1346_s27  ;;  %s266_s27 = scalar_lea.vmem %s1565_s4, %s1254_s19 }
  0x38   : > { %335 = vrot.lane.b32.xlu1 %v501_v3, %s1347_s28  ;;  %333 = vrot.lane.b32.xlu0 %v1409_v1, %s1347_s28 }
  0x3c   : > { %339 = vrot.lane.b32.xlu1 %v503_v2, %s1347_s28  ;;  %337 = vrot.lane.b32.xlu0 %v1406_v0, %s1347_s28 }
  0x40   : > { %299 = vrot.lane.b32.xlu1 %v501_v3, %s1348_s29  ;;  %297 = vrot.lane.b32.xlu0 %v1409_v1, %s1348_s29 }
  0x44   : > { %303 = vrot.lane.b32.xlu1 %v503_v2, %s1348_s29  ;;  %301 = vrot.lane.b32.xlu0 %v1406_v0, %s1348_s29 }
  0x48   : > { %545 = vrot.lane.b32.xlu1 %v501_v3, %s1349_s6  ;;  %543 = vrot.lane.b32.xlu0 %v1409_v1, %s1349_s6  ;;  %v1316_v1 = vld [vmem:[%s1562_s1 + $0x10] ss:$8 sps:$4 sm:$0xff]  }
  0x4c   : > { %549 = vrot.lane.b32.xlu1 %v503_v2, %s1349_s6  ;;  %547 = vrot.lane.b32.xlu0 %v1406_v0, %s1349_s6 }
  0x82   : > { %v513_v10 = vpop.permute.xlu1 %512  ;;  %v509_v11 = vpop.permute.xlu0 %508 }
  0x83   : > { %v518_v14 = vrot.slane %v513_v10, 4  ;;  %v516_v15 = vrot.slane %v509_v11, 4 }
  0x86   : > { %v515_v12 = vpop.permute.xlu1 %514  ;;  %v511_v13 = vpop.permute.xlu0 %510 }
  0x87   : > { %v519_v16 = vrot.slane %v515_v12, 4  ;;  %v517_v17 = vrot.slane %v511_v13, 4 }
  0x89   : > { %v524_v18 = vsel %vm309_vm1, %v518_v14, %v519_v16  ;;  %v526_v19 = vsel %vm521_vm2, %v515_v12, %v519_v16  ;;  %v520_v20 = vsel %vm309_vm1, %v516_v15, %v517_v17  ;;  %v523_v21 = vsel %vm521_vm2, %v511_v13, %v517_v17 }
  0x8a   : > { %v525_v22 = vsel %vm521_vm2, %v513_v10, %v524_v18  ;;  %534 = vst [vmem:[#allocation2 + $0xbc] sm:$0xf] %v526_v19  ;;  %v522_v23 = vsel %vm521_vm2, %v509_v11, %v520_v20  ;;  %532 = vst [vmem:[#allocation2 + $0xb0] sm:$0xf] %v523_v21  ;;  %v476_v24 = vpop.permute.xlu1 %475  ;;  %v474_v25 = vpop.permute.xlu0 %473 }
  0x8b   : > { %v482_v26 = vrot.slane %v476_v24, 4  ;;  %v481_v27 = vrot.slane %v474_v25, 4  ;;  %v1235_v28 = vcombine.high %v522_v23, %v525_v22  ;;  %v1234_v29 = vcombine.low %v522_v23, %v525_v22 }
  0x8d   : > { %v488_v30 = vsel %vm486_vm3, %v476_v24, %v482_v26  ;;  %v485_v31 = vsel %vm309_vm1, %v481_v27, %v482_v26  ;;  %779 = vmatprep.subr.bf16.mxu0 %v1235_v28 }
  0x8e   : > { %497 = vst [vmem:[#allocation2 + $0x98] sm:$0xf] %v488_v30  ;;  %v487_v32 = vsel %vm486_vm3, %v474_v25, %v485_v31  ;;  %v480_v33 = vpop.permute.xlu1 %479  ;;  %v478_v34 = vpop.permute.xlu0 %477  ;;  %780 = vmatpush1.bf16.msra.mxu0 %v1234_v29 }
  0x8f   : > { %v484_v35 = vrot.slane %v480_v33, 4  ;;  %v483_v36 = vrot.slane %v478_v34, 4 }
  0x91   : > { %v491_v37 = vsel %vm486_vm3, %v480_v33, %v484_v35  ;;  %v489_v38 = vsel %vm309_vm1, %v483_v36, %v484_v35  ;;  %v1300_v39 = vld [vmem:[#allocation2 + $0xb0] ss:$12 sps:$4 sm:$0xff]  }
  0x92   : > { %499 = vst [vmem:[#allocation2 + $0xa4] sm:$0xf] %v491_v37  ;;  %v490_v40 = vsel %vm486_vm3, %v478_v34, %v489_v38  ;;  %v441_v41 = vpop.permute.xlu1 %440  ;;  %v439_v42 = vpop.permute.xlu0 %438  ;;  %833 = vmatpush1.bf16.msra.mxu1 %v1300_v39 }
  0x93   : > { %v447_v43 = vrot.slane %v441_v41, 4  ;;  %v446_v44 = vrot.slane %v439_v42, 4  ;;  %v1232_v45 = vcombine.high %v487_v32, %v490_v40  ;;  %v1231_v46 = vcombine.low %v487_v32, %v490_v40  ;;  %834 = vmatprep.subr.bf16.mxu1 %v1342_v4 }
  0x95   : > { %v453_v47 = vsel %vm451_vm4, %v441_v41, %v447_v43  ;;  %v450_v48 = vsel %vm309_vm1, %v446_v44, %v447_v43  ;;  %781 = vmatprep.subr.bf16.mxu0 %v1232_v45 }
  0x96   : > { %462 = vst [vmem:[#allocation2 + $0x80] sm:$0xf] %v453_v47  ;;  %v452_v49 = vsel %vm451_vm4, %v439_v42, %v450_v48  ;;  %v445_v50 = vpop.permute.xlu1 %444  ;;  %v443_v51 = vpop.permute.xlu0 %442  ;;  %782 = vmatpush1.bf16.msra.mxu0 %v1231_v46 }
  0x97   : > { %v449_v52 = vrot.slane %v445_v50, 4  ;;  %v448_v53 = vrot.slane %v443_v51, 4 }
  0x99   : > { %v456_v54 = vsel %vm451_vm4, %v445_v50, %v449_v52  ;;  %v454_v55 = vsel %vm309_vm1, %v448_v53, %v449_v52  ;;  %v1301_v56 = vld [vmem:[#allocation2 + $0x98] ss:$12 sps:$4 sm:$0xff]  }
  0x9a   : > { %464 = vst [vmem:[#allocation2 + $0x8c] sm:$0xf] %v456_v54  ;;  %v455_v57 = vsel %vm451_vm4, %v443_v51, %v454_v55  ;;  %v406_v58 = vpop.permute.xlu1 %405  ;;  %v404_v59 = vpop.permute.xlu0 %403  ;;  %835 = vmatpush1.bf16.msra.mxu1 %v1301_v56 }
  0x9b   : > { %v412_v60 = vrot.slane %v406_v58, 4  ;;  %v411_v61 = vrot.slane %v404_v59, 4  ;;  %v1229_v62 = vcombine.high %v452_v49, %v455_v57  ;;  %v1228_v63 = vcombine.low %v452_v49, %v455_v57  ;;  %836 = vmatprep.subr.bf16.mxu1 %v1342_v4 }
  0x9d   : > { %v418_v2 = vsel %vm416_vm5, %v406_v58, %v412_v60  ;;  %v415_v3 = vsel %vm309_vm1, %v411_v61, %v412_v60  ;;  %783 = vmatprep.subr.bf16.mxu0 %v1229_v62 }
  0x9e   : > { %427 = vst [vmem:[#allocation2 + $0x68] sm:$0xf] %v418_v2  ;;  %v417_v5 = vsel %vm416_vm5, %v404_v59, %v415_v3  ;;  %v410_v6 = vpop.permute.xlu1 %409  ;;  %v408_v9 = vpop.permute.xlu0 %407  ;;  %784 = vmatpush1.bf16.msra.mxu0 %v1228_v63 }
  0x9f   : > { %v414_v10 = vrot.slane %v410_v6, 4  ;;  %v413_v11 = vrot.slane %v408_v9, 4 }
  0xa1   : > { %v421_v12 = vsel %vm416_vm5, %v410_v6, %v414_v10  ;;  %v419_v13 = vsel %vm309_vm1, %v413_v11, %v414_v10  ;;  %v1302_v14 = vld [vmem:[#allocation2 + $0x80] ss:$12 sps:$4 sm:$0xff]  }
  0xa2   : > { %429 = vst [vmem:[#allocation2 + $0x74] sm:$0xf] %v421_v12  ;;  %v420_v15 = vsel %vm416_vm5, %v408_v9, %v419_v13  ;;  %v371_v16 = vpop.permute.xlu1 %370  ;;  %v369_v17 = vpop.permute.xlu0 %368  ;;  %837 = vmatpush1.bf16.msra.mxu1 %v1302_v14 }
  0xa3   : > { %v377_v18 = vrot.slane %v371_v16, 4  ;;  %v376_v19 = vrot.slane %v369_v17, 4  ;;  %v1226_v20 = vcombine.high %v417_v5, %v420_v15  ;;  %v1225_v21 = vcombine.low %v417_v5, %v420_v15  ;;  %838 = vmatprep.subr.bf16.mxu1 %v1342_v4 }
  0xa5   : > { %v383_v22 = vsel %vm381_vm6, %v371_v16, %v377_v18  ;;  %v380_v23 = vsel %vm309_vm1, %v376_v19, %v377_v18  ;;  %785 = vmatprep.subr.bf16.mxu0 %v1226_v20 }
  0xa6   : > { %392 = vst [vmem:[#allocation2 + $0x50] sm:$0xf] %v383_v22  ;;  %v382_v24 = vsel %vm381_vm6, %v369_v17, %v380_v23  ;;  %v375_v25 = vpop.permute.xlu1 %374  ;;  %v373_v26 = vpop.permute.xlu0 %372  ;;  %786 = vmatpush1.bf16.msra.mxu0 %v1225_v21 }
  0xa7   : > { %v379_v27 = vrot.slane %v375_v25, 4  ;;  %v378_v28 = vrot.slane %v373_v26, 4 }
  0xa9   : > { %v386_v29 = vsel %vm381_vm6, %v375_v25, %v379_v27  ;;  %v384_v30 = vsel %vm309_vm1, %v378_v28, %v379_v27  ;;  %v1303_v31 = vld [vmem:[#allocation2 + $0x68] ss:$12 sps:$4 sm:$0xff]  }
  0xaa   : > { %394 = vst [vmem:[#allocation2 + $0x5c] sm:$0xf] %v386_v29  ;;  %v385_v32 = vsel %vm381_vm6, %v373_v26, %v384_v30  ;;  %v336_v33 = vpop.permute.xlu1 %335  ;;  %v334_v34 = vpop.permute.xlu0 %333  ;;  %839 = vmatpush1.bf16.msra.mxu1 %v1303_v31  ;;  %v1307_v25 = vld [vmem:[#allocation2 + $0x8] ss:$12 sps:$4 sm:$0xff]   ;;  %v881_v31 = vld [vmem:[%s1563_s2] sm:$0x7] }
  0xab   : > { %v342_v35 = vrot.slane %v336_v33, 4  ;;  %v341_v36 = vrot.slane %v334_v34, 4  ;;  %v1223_v37 = vcombine.high %v382_v24, %v385_v32  ;;  %v1222_v38 = vcombine.low %v382_v24, %v385_v32  ;;  %840 = vmatprep.subr.bf16.mxu1 %v1342_v4  ;;  %v1314_v28 = vld [vmem:[%s1562_s1 + $0x14] ss:$8 sps:$4 sm:$0xff]  }
  0xad   : > { %v348_v39 = vsel %vm346_vm7, %v336_v33, %v342_v35  ;;  %v345_v40 = vsel %vm309_vm1, %v341_v36, %v342_v35  ;;  %787 = vmatprep.subr.bf16.mxu0 %v1223_v37 }
  0xae   : > { %357 = vst [vmem:[#allocation2 + $0x38] sm:$0xf] %v348_v39  ;;  %v347_v41 = vsel %vm346_vm7, %v334_v34, %v345_v40  ;;  %v340_v42 = vpop.permute.xlu1 %339  ;;  %v338_v43 = vpop.permute.xlu0 %337  ;;  %788 = vmatpush1.bf16.msra.mxu0 %v1222_v38 }
  0xaf   : > { %v344_v44 = vrot.slane %v340_v42, 4  ;;  %v343_v45 = vrot.slane %v338_v43, 4 }
  0xb1   : > { %v351_v46 = vsel %vm346_vm7, %v340_v42, %v344_v44  ;;  %v349_v47 = vsel %vm309_vm1, %v343_v45, %v344_v44  ;;  %v1304_v48 = vld [vmem:[#allocation2 + $0x50] ss:$12 sps:$4 sm:$0xff]  }
  0xb2   : > { %359 = vst [vmem:[#allocation2 + $0x44] sm:$0xf] %v351_v46  ;;  %v350_v49 = vsel %vm346_vm7, %v338_v43, %v349_v47  ;;  %v300_v50 = vpop.permute.xlu1 %299  ;;  %v298_v51 = vpop.permute.xlu0 %297  ;;  %841 = vmatpush1.bf16.msra.mxu1 %v1304_v48 }
  0xb3   : > { %v306_v52 = vrot.slane %v300_v50, 4  ;;  %v305_v53 = vrot.slane %v298_v51, 4  ;;  %v1220_v54 = vcombine.high %v347_v41, %v350_v49  ;;  %v1219_v55 = vcombine.low %v347_v41, %v350_v49  ;;  %842 = vmatprep.subr.bf16.mxu1 %v1342_v4 }
  0xb5   : > { %v313_v56 = vsel %vm311_vm8, %v300_v50, %v306_v52  ;;  %v310_v57 = vsel %vm309_vm1, %v305_v53, %v306_v52  ;;  %789 = vmatprep.subr.bf16.mxu0 %v1220_v54 }
  0xb6   : > { %322 = vst [vmem:[#allocation2 + $0x20] sm:$0xf] %v313_v56  ;;  %v312_v58 = vsel %vm311_vm8, %v298_v51, %v310_v57  ;;  %v304_v59 = vpop.permute.xlu1 %303  ;;  %v302_v60 = vpop.permute.xlu0 %301  ;;  %790 = vmatpush1.bf16.msra.mxu0 %v1219_v55 }
  0xb7   : > { %v308_v61 = vrot.slane %v304_v59, 4  ;;  %v307_v62 = vrot.slane %v302_v60, 4 }
  0xb9   : > { %v316_v63 = vsel %vm311_vm8, %v304_v59, %v308_v61  ;;  %v314_v2 = vsel %vm309_vm1, %v307_v62, %v308_v61  ;;  %v1305_v3 = vld [vmem:[#allocation2 + $0x38] ss:$12 sps:$4 sm:$0xff]  }
  0xba   : > { %324 = vst [vmem:[#allocation2 + $0x2c] sm:$0xf] %v316_v63  ;;  %v315_v5 = vsel %vm311_vm8, %v302_v60, %v314_v2  ;;  %v546_v6 = vpop.permute.xlu1 %545  ;;  %v544_v9 = vpop.permute.xlu0 %543  ;;  %843 = vmatpush1.bf16.msra.mxu1 %v1305_v3 }
  0xbb   : > { %v552_v10 = vrot.slane %v546_v6, 4  ;;  %v551_v11 = vrot.slane %v544_v9, 4  ;;  %v1217_v12 = vcombine.high %v312_v58, %v315_v5  ;;  %v1216_v13 = vcombine.low %v312_v58, %v315_v5  ;;  %844 = vmatprep.subr.bf16.mxu1 %v1342_v4 }
  0xbd   : > { %v558_v14 = vsel %vm556_vm9, %v546_v6, %v552_v10  ;;  %v555_v15 = vsel %vm309_vm1, %v551_v11, %v552_v10  ;;  %791 = vmatprep.subr.bf16.mxu0 %v1217_v12 }
  0xbe   : > { %567 = vst [vmem:[#allocation2 + $0xc8] sm:$0xf] %v558_v14  ;;  %v557_v16 = vsel %vm556_vm9, %v544_v9, %v555_v15  ;;  %v550_v17 = vpop.permute.xlu1 %549  ;;  %v548_v18 = vpop.permute.xlu0 %547  ;;  %792 = vmatpush1.bf16.msra.mxu0 %v1216_v13 }
  0xbf   : > { %v554_v19 = vrot.slane %v550_v17, 4  ;;  %v553_v20 = vrot.slane %v548_v18, 4  ;;  %793 = vmatprep.subr.bf16.mxu0 %v1214_v7  ;;  %v1311_v7 = vld [vmem:[%s1562_s1] ss:$8 sps:$4 sm:$0xff]  }
  0xc1   : > { %v561_v21 = vsel %vm556_vm9, %v550_v17, %v554_v19  ;;  %v559_v22 = vsel %vm309_vm1, %v553_v20, %v554_v19  ;;  %v1306_v23 = vld [vmem:[#allocation2 + $0x20] ss:$12 sps:$4 sm:$0xff]  }
  0xc2   : > { %569 = vst [vmem:[#allocation2 + $0xd4] sm:$0xf] %v561_v21  ;;  %v560_v24 = vsel %vm556_vm9, %v548_v18, %v559_v22  ;;  %794 = vmatpush1.bf16.msra.mxu0 %v1213_v8  ;;  %845 = vmatpush1.bf16.msra.mxu1 %v1306_v23  ;;  %v1350_v8 = vmov 0.0  }
  0xc3   : > { %v1238_v26 = vcombine.high %v557_v16, %v560_v24  ;;  %v1237_v27 = vcombine.low %v557_v16, %v560_v24  ;;  %846 = vmatprep.subr.bf16.mxu1 %v1342_v4  ;;  %277 = vst.msk [vmem:[#allocation4] sm:$0xff] %vm272_vm10, %v1350_v8  ;;  %273 = vst.msk [vmem:[#allocation3] sm:$0xff] %vm272_vm10, %v1350_v8 }
  0xc4   : > { %274 = vst.msk [vmem:[#allocation3 + $0x8] sm:$0xff] %vm272_vm10, %v1350_v8  ;;  %275 = vst.msk [vmem:[#allocation3 + $0x10] sm:$0xff] %vm272_vm10, %v1350_v8 }
  0xc5   : > { %809 = vmatprep.subr.bf16.mxu0 %v1238_v26  ;;  %276 = vst.msk [vmem:[#allocation3 + $0x18] sm:$0xff] %vm272_vm10, %v1350_v8  ;;  %278 = vst.msk [vmem:[#allocation4 + $0x8] sm:$0xff] %vm272_vm10, %v1350_v8 }
  0xc6   : > { %810 = vmatpush2.bf16.msra.mxu0 %v1237_v27  ;;  %847 = vmatpush1.bf16.msra.mxu1 %v1307_v25  ;;  %279 = vst.msk [vmem:[#allocation4 + $0x10] sm:$0xff] %vm272_vm10, %v1350_v8  ;;  %280 = vst.msk [vmem:[#allocation4 + $0x18] sm:$0xff] %vm272_vm10, %v1350_v8 }
  0xc7   : > { %862 = vmatprep.subr.bf16.mxu1 %v1342_v4  ;;  %v883_v4 = vlaneseq }
  0xc9   : > { %v1310_v0 = vld [vmem:[#allocation2 + $0xc8] ss:$12 sps:$4 sm:$0xff]   ;;  %812 = vmatmul.mubr.bf16.vlgmr.msra.gmra.mxu0 %v1311_v7  ;;  %v884_v29 = vshrl.u32 %v883_v4, 7 }
  0xca   : > { %1241 = vmatprep.mubr.msk.bf16.mxu0 %vm772_vm0, %v1314_v28  ;;  %863 = vmatpush2.bf16.msra.mxu1 %v1310_v0 }
  0xcb   : > { %v885_v30 = vsub.s32 0, %v884_v29  ;;  %v889_v32 = vsub.s32 1, %v884_v29  ;;  %v893_v34 = vsub.s32 2, %v884_v29 }
  0xcd   : > { %865 = vmatmul.mubr.bf16.vlgmr.msra.gmra.mxu1 %v1311_v7  ;;  %v886_v33 = vrot.slane %v881_v31, %v885_v30  ;;  %v890_v35 = vrot.slane %v881_v31, %v889_v32  ;;  %v894_v38 = vrot.slane %v881_v31, %v893_v34 }
  0xce   : > { %1243 = vmatprep.mubr.msk.bf16.mxu1 %vm772_vm0, %v1314_v28 }
  0xd1   : > { %822 = vmatmul.mubr.bf16.gmra.mxu0 %v1316_v1 }
  0xd5   : > { %873 = vmatmul.mubr.bf16.gmra.mxu1 %v1316_v1 }
 0x189   : > { %v813_v36 = vpop.f32.mrf.mxu0 }
 0x18a   : > { %v898_v37 = vmul.f32 %v886_v33, %v813_v36 }
 0x18b   : > { %v815_v39 = vpop.f32.mrf.mxu0 }
 0x18c   : > { %v943_v40 = vmul.f32 %v898_v37, %v898_v37  ;;  %v899_v41 = vmul.f32 %v890_v35, %v815_v39  ;;  %v1256_v42 = vpack.c.bf16 %v815_v39, %v813_v36 }
 0x18d   : > { %v817_v43 = vpop.f32.mrf.mxu0  ;;  %v866_v44 = vpop.f32.mrf.mxu1 }
 0x18e   : > { %v944_v45 = vmul.f32 %v899_v41, %v899_v41  ;;  %1019 = vst [vmem:[%s1525_s23] sm:$0xff] %v1256_v42  ;;  %v901_v46 = vmul.f32 %v886_v33, %v817_v43  ;;  %v900_v47 = vmul.f32 %v894_v38, %v866_v44  ;;  %v1257_v48 = vpack.c.bf16 %v866_v44, %v866_v44  ;;  %v941_v44 = vld [vmem:[#allocation4 + $0x10] sm:$0xff] }
 0x18f   : > { %v819_v49 = vpop.f32.mrf.mxu0  ;;  %v868_v50 = vpop.f32.mrf.mxu1  ;;  %v914_v15 = vadd.f32 %v899_v41, %v898_v37  ;;  %v939_v37 = vld [vmem:[#allocation4] sm:$0xff] }
 0x190   : > { %v902_v51 = vmul.f32 %v890_v35, %v819_v49  ;;  %v1258_v52 = vpack.c.bf16 %v819_v49, %v817_v43  ;;  %v955_v53 = vadd.f32 %v944_v45, %v943_v40  ;;  %1020 = vst [vmem:[%s1525_s23 + $0x8] sm:$0xf] %v1257_v48  ;;  %v945_v55 = vmul.f32 %v900_v47, %v900_v47  ;;  %v940_v40 = vld [vmem:[#allocation4 + $0x8] sm:$0xff]  ;;  %v910_v43 = vld [vmem:[#allocation3] sm:$0xff]  ;;  %v912_v50 = vld [vmem:[#allocation3 + $0x10] sm:$0xff] }
 0x191   : > { %v823_v54 = vpop.f32.mrf.mxu0  ;;  %v869_v56 = vpop.f32.mrf.mxu1  ;;  %v946_v57 = vmul.f32 %v901_v46, %v901_v46  ;;  %v915_v7 = vadd.f32 %v914_v15, %v900_v47 }
 0x192   : > { %v947_v58 = vmul.f32 %v902_v51, %v902_v51  ;;  %1021 = vst [vmem:[%s1525_s23 + $0xc] sm:$0xff] %v1258_v52  ;;  %v904_v59 = vmul.f32 %v886_v33, %v823_v54  ;;  %v903_v60 = vmul.f32 %v894_v38, %v869_v56  ;;  %v1259_v61 = vpack.c.bf16 %v869_v56, %v869_v56 }
 0x193   : > { %v825_v62 = vpop.f32.mrf.mxu0  ;;  %v956_v63 = vadd.f32 %v955_v53, %v945_v55  ;;  %v871_v2 = vpop.f32.mrf.mxu1 }
 0x194   : > { %v949_v3 = vmul.f32 %v904_v59, %v904_v59  ;;  %v905_v5 = vmul.f32 %v890_v35, %v825_v62  ;;  %v1260_v6 = vpack.c.bf16 %v825_v62, %v823_v54  ;;  %v959_v9 = vadd.f32 %v947_v58, %v946_v57  ;;  %1022 = vst [vmem:[%s1525_s23 + $0x14] sm:$0xf] %v1259_v61  ;;  %v911_v57 = vld [vmem:[#allocation3 + $0x8] sm:$0xff]  ;;  %v913_v61 = vld [vmem:[#allocation3 + $0x18] sm:$0xff] }
 0x195   : > { %957 = vadd.xlane.f32.xlu0 %v956_v63  ;;  %v827_v10 = vpop.f32.mrf.mxu0  ;;  %v948_v11 = vmul.f32 %v903_v60, %v903_v60  ;;  %v874_v12 = vpop.f32.mrf.mxu1 }
 0x196   : > { %v950_v13 = vmul.f32 %v905_v5, %v905_v5  ;;  %1023 = vst [vmem:[%s1525_s23 + $0x18] sm:$0xff] %v1260_v6  ;;  %v907_v14 = vmul.f32 %v886_v33, %v827_v10  ;;  %v906_v16 = vmul.f32 %v894_v38, %v874_v12  ;;  %v1261_v17 = vpack.c.bf16 %v874_v12, %v874_v12 }
 0x197   : > { %v829_v18 = vpop.f32.mrf.mxu0  ;;  %v960_v19 = vadd.f32 %v959_v9, %v948_v11  ;;  %v876_v20 = vpop.f32.mrf.mxu1  ;;  %v922_v8 = vadd.f32 %v905_v5, %v904_v59  ;;  %v918_v33 = vadd.f32 %v902_v51, %v901_v46  ;;  %v942_v51 = vld [vmem:[#allocation4 + $0x18] sm:$0xff] }
 0x198   : > { %v908_v21 = vmul.f32 %v890_v35, %v829_v18  ;;  %v1262_v22 = vpack.c.bf16 %v829_v18, %v827_v10  ;;  %v963_v23 = vadd.f32 %v950_v13, %v949_v3  ;;  %1024 = vst [vmem:[%s1525_s23 + $0x20] sm:$0xf] %v1261_v17  ;;  %v951_v24 = vmul.f32 %v906_v16, %v906_v16 }
 0x199   : > { %961 = vadd.xlane.f32.xlu1 %v960_v19  ;;  %v877_v25 = vpop.f32.mrf.mxu1  ;;  %v952_v26 = vmul.f32 %v907_v14, %v907_v14  ;;  %v923_v31 = vadd.f32 %v922_v8, %v906_v16  ;;  %v919_v35 = vadd.f32 %v918_v33, %v903_v60 }
 0x19a   : > { %v953_v27 = vmul.f32 %v908_v21, %v908_v21  ;;  %1025 = vst [vmem:[%s1525_s23 + $0x24] sm:$0xff] %v1262_v22  ;;  %v909_v28 = vmul.f32 %v894_v38, %v877_v25  ;;  %v1263_v0 = vpack.c.bf16 %v877_v25, %v877_v25  ;;  %v964_v1 = vadd.f32 %v963_v23, %v951_v24 }
 0x19b   : > { %v879_v4 = vpop.f32.mrf.mxu1  ;;  %v926_v34 = vadd.f32 %v908_v21, %v907_v14 }
 0x19c   : > { %v967_v29 = vadd.f32 %v953_v27, %v952_v26  ;;  %1026 = vst [vmem:[%s1525_s23 + $0x2c] sm:$0xf] %v1263_v0  ;;  %965 = vadd.xlane.f32.xlu0 %v964_v1  ;;  %v954_v30 = vmul.f32 %v909_v28, %v909_v28 }
 0x19d   : > { %916 = vadd.xlane.f32.xlu1 %v915_v7  ;;  %v927_v36 = vadd.f32 %v926_v34, %v909_v28 }
 0x19e   : > { %v968_v32 = vadd.f32 %v967_v29, %v954_v30 }
 0x1a0   : > { %969 = vadd.xlane.f32.xlu0 %v968_v32 }
 0x1a1   : > { %924 = vadd.xlane.f32.xlu1 %v923_v31 }
 0x1a4   : > { %920 = vadd.xlane.f32.xlu0 %v919_v35 }
 0x1a8   : > { %928 = vadd.xlane.f32.xlu0 %v927_v36 }
 0x21e   : > { %v958_v38 = vpop.xlane.xlu0 %957 }
 0x21f   : > { %v971_v39 = vadd.f32 %v958_v38, %v939_v37 }
 0x221   : > { %975 = vst.msk [vmem:[#allocation4] sm:$0xff] %vm272_vm10, %v971_v39 }
 0x222   : > { %v962_v41 = vpop.xlane.xlu1 %961 }
 0x223   : > { %v972_v42 = vadd.f32 %v962_v41, %v940_v40 }
 0x225   : > { %976 = vst.msk [vmem:[#allocation4 + $0x8] sm:$0xff] %vm272_vm10, %v972_v42  ;;  %v966_v46 = vpop.xlane.xlu0 %965 }
 0x226   : > { %v917_v45 = vpop.xlane.xlu1 %916  ;;  %v973_v48 = vadd.f32 %v966_v46, %v941_v44 }
 0x227   : > { %v930_v47 = vadd.f32 %v917_v45, %v910_v43 }
 0x228   : > { %v1038_v49 = vld [vmem:[#allocation4] sm:$0xff]  ;;  %977 = vst.msk [vmem:[#allocation4 + $0x10] sm:$0xff] %vm272_vm10, %v973_v48 }
 0x229   : > { %935 = vst.msk [vmem:[#allocation3] sm:$0xff] %vm272_vm10, %v930_v47  ;;  %1046 = vrot.lane.b32.xlu1 %v1038_v49, %s1351_s24  ;;  %v970_v53 = vpop.xlane.xlu0 %969 }
 0x22a   : > { %v925_v52 = vpop.xlane.xlu1 %924  ;;  %v974_v55 = vadd.f32 %v970_v53, %v942_v51 }
 0x22b   : > { %v932_v54 = vadd.f32 %v925_v52, %v912_v50 }
 0x22c   : > { %v1039_v56 = vld [vmem:[#allocation4 + $0x8] sm:$0xff]  ;;  %978 = vst.msk [vmem:[#allocation4 + $0x18] sm:$0xff] %vm272_vm10, %v974_v55 }
 0x22d   : > { %937 = vst.msk [vmem:[#allocation3 + $0x10] sm:$0xff] %vm272_vm10, %v932_v54  ;;  %1048 = vrot.lane.b32.xlu0 %v1039_v56, %s1351_s24  ;;  %v921_v58 = vpop.xlane.xlu0 %920 }
 0x22e   : > { %v931_v59 = vadd.f32 %v921_v58, %v911_v57 }
 0x22f   : > { %v1040_v60 = vld [vmem:[#allocation4 + $0x10] sm:$0xff] }
 0x230   : > { %v1030_v62 = vld [vmem:[#allocation3] sm:$0xff]  ;;  %936 = vst.msk [vmem:[#allocation3 + $0x8] sm:$0xff] %vm272_vm10, %v931_v59  ;;  %1050 = vrot.lane.b32.xlu1 %v1040_v60, %s1351_s24 }
 0x231   : > { %1034 = vst.msk [vmem:[%s266_s27] sm:$0xff] %vm272_vm10, %v1030_v62  ;;  %v929_v63 = vpop.xlane.xlu0 %928 }
 0x232   : > { %v933_v2 = vadd.f32 %v929_v63, %v913_v61 }
 0x233   : > { %v1041_v3 = vld [vmem:[#allocation4 + $0x18] sm:$0xff] }
 0x234   : > { %v1032_v5 = vld [vmem:[#allocation3 + $0x10] sm:$0xff]  ;;  %938 = vst.msk [vmem:[#allocation3 + $0x18] sm:$0xff] %vm272_vm10, %v933_v2  ;;  %1052 = vrot.lane.b32.xlu1 %v1041_v3, %s1351_s24 }
 0x235   : > { %1036 = vst.msk [vmem:[%s266_s27 + $0x10] sm:$0xff] %vm272_vm10, %v1032_v5 }
 0x237   : > { %v1031_v6 = vld [vmem:[#allocation3 + $0x8] sm:$0xff] }
 0x238   : > { %1035 = vst.msk [vmem:[%s266_s27 + $0x8] sm:$0xff] %vm272_vm10, %v1031_v6 }
 0x23b   : > { %v1033_v9 = vld [vmem:[#allocation3 + $0x18] sm:$0xff] }
 0x23c   : > { %1037 = vst.msk [vmem:[%s266_s27 + $0x18] sm:$0xff] %vm272_vm10, %v1033_v9 }
 0x29b   : > { %v1047_v10 = vpop.permute.xlu1 %1046 }
 0x29c   : > { %1059 = vst.msk [vmem:[%s266_s27] sm:$0xff] %vm1058_vm11, %v1047_v10 }
 0x29f   : > { %v1049_v11 = vpop.permute.xlu0 %1048 }
 0x2a0   : > { %1060 = vst.msk [vmem:[%s266_s27 + $0x8] sm:$0xff] %vm1058_vm11, %v1049_v11 }
 0x2a2   : > { %v1051_v12 = vpop.permute.xlu1 %1050 }
 0x2a3   : > { %1061 = vst.msk [vmem:[%s266_s27 + $0x10] sm:$0xff] %vm1058_vm11, %v1051_v12 }
 0x2a6   : > { %v1053_v13 = vpop.permute.xlu1 %1052 }
 0x2a7   : > { %1062 = vst.msk [vmem:[%s266_s27 + $0x18] sm:$0xff] %vm1058_vm11, %v1053_v13 }
 0x2a8 PF: > { %s15_s17 = sadd.s32 1, %s1339_s17   ;;  %s1566_s15 = smov %s1335_s16 }
 0x2a9   : > { %p12_p5 = scmp.ge.s32.totalorder %s15_s17, 4   ;;  %s1567_s16 = smov %s1569_s18 }
 0x2ab   :  { %14 = sbr.rel (!%p12_p5) target bundleno = 2 (0x2), region = 85 }

</bundles_post_ra>
